<compile_context>
chip_gen: v7x
topology: tpu7x:2x2x1
jax: 0.10.0
libtpu: 0.0.40
codegen_flags: <defaults>
</compile_context>

<pallas_src>
import functools
from typing import NamedTuple, Optional

import jax
import jax.numpy as jnp
from jax.experimental import pallas as pl
from jax.experimental.pallas import tpu as pltpu

_LANE = 128


def _round_up(x, m):
    return ((x + m - 1) // m) * m


def _vmem_capacity_bytes():
    try:
        return int(pltpu.get_tpu_info().vmem_capacity_bytes)
    except Exception:
        return 64 << 20  # conservative fallback: v7x per-TensorCore VMEM


class PreparedParams(NamedTuple):
    w1t: jax.Array     # [I, H]       matmul dtype
    b1: jax.Array      # [1, H]       f32
    w2t: jax.Array     # [H, O_pad]   matmul dtype, zero-padded columns
    b2: jax.Array      # [1, O_pad]   f32, zero-padded
    out_features: int  # O (unpadded)


def prepare_params(w1, b1, w2, b2, *, matmul_dtype=None):
    """One-time parameter prep, hoisted out of the per-forward path.

    w1: [H, I], b1: [H], w2: [O, H], b2: [O]  (PyTorch nn.Linear layout).
    Pre-transposes to [in, out] so both matmuls feed the MXU directly,
    optionally casts matmul operands (bf16 recommended at production sizes on
    every generation), and zero-pads the output feature dim to 128 lanes so
    kernel stores are lane-dense.
    """
    H, I = w1.shape
    O = w2.shape[0]
    O_pad = max(_round_up(O, _LANE), _LANE)

    w1t = jnp.transpose(w1)            # [I, H]
    w2t = jnp.transpose(w2)            # [H, O]
    if O_pad != O:
        w2t = jnp.pad(w2t, ((0, 0), (0, O_pad - O)))
    if matmul_dtype is not None:
        w1t = w1t.astype(matmul_dtype)
        w2t = w2t.astype(matmul_dtype)

    b1_2d = b1.reshape(1, H).astype(jnp.float32)
    b2_2d = b2.reshape(1, O).astype(jnp.float32)
    if O_pad != O:
        b2_2d = jnp.pad(b2_2d, ((0, 0), (0, O_pad - O)))

    return PreparedParams(w1t, b1_2d, w2t, b2_2d, O)


def _mlp_kernel(x_ref, w1_ref, b1_ref, w2_ref, b2_ref, o_ref, acc_ref):
    h_idx = pl.program_id(1)

    @pl.when(h_idx == 0)
    def _():
        acc_ref[...] = jnp.zeros_like(acc_ref)

    # fc1 chunk: [tb, I] @ [I, tH] -> f32 accumulation on the MXU (no transposes).
    pre = jnp.dot(x_ref[...], w1_ref[...], preferred_element_type=jnp.float32)
    # Bias add + sigmoid stay f32; sigmoid lowers to the EUP (lax.logistic).
    act = jax.nn.sigmoid(pre + b1_ref[...])
    # fc2 partial: [tb, tH] @ [tH, O_pad]; accumulate in the f32 VMEM scratch.
    acc_ref[...] += jnp.dot(act.astype(w2_ref.dtype), w2_ref[...],
                            preferred_element_type=jnp.float32)

    @pl.when(h_idx == pl.num_programs(1) - 1)
    def _():
        o_ref[...] = (acc_ref[...] + b2_ref[...]).astype(o_ref.dtype)


def simple_feedforward_net(x, params: PreparedParams, *,
                           block_batch: Optional[int] = None,
                           block_hidden: Optional[int] = None):
    """Fused fc1 -> sigmoid -> fc2.  x: [B, I]; returns [B, O] in x.dtype."""
    B, I = x.shape
    H = params.w1t.shape[1]
    O_pad = params.w2t.shape[1]
    O = params.out_features

    mm_dtype = params.w1t.dtype
    x_in = x if x.dtype == mm_dtype else x.astype(mm_dtype)

    in_item = jnp.dtype(mm_dtype).itemsize
    out_item = jnp.dtype(x.dtype).itemsize
    vmem_cap = _vmem_capacity_bytes()

    # ---- batch tile: generation-aware cap, multiple of 256 for the MXU ----
    if block_batch is None:
        block_batch = 1024 if vmem_cap >= (96 << 20) else 512
    tb = min(block_batch, B)
    if tb < B:
        tb = (tb // 256) * 256 if tb >= 256 else max(8, (tb // 8) * 8)

    # ---- hidden tile: stream H only if resident weights would not fit ----
    weight_bytes = (I * H + H * O_pad) * in_item
    if block_hidden is not None:
        tH = min(block_hidden, H)
    elif (weight_bytes + tb * H * 4) > vmem_cap // 4 and H % _LANE == 0:
        tH = H
        for cand in (2048, 1024, 512, 256, 128):
            if H % cand == 0:
                tH = cand
                break
    else:
        tH = H
    if tH != H and (H % tH != 0 or tH % _LANE != 0):
        tH = H  # partial hidden chunks unsupported; fall back to resident

    # ---- exact VMEM working-set budget (no 4x hedge) ----
    def _budget(tb_, tH_):
        streamed = 2 * tb_ * I * in_item + 2 * tb_ * O_pad * out_item
        w_bufs = 1 if (H // tH_) == 1 else 2
        resident = w_bufs * ((I * tH_ + tH_ * O_pad) * in_item + tH_ * 4) + O_pad * 4
        scratch = tb_ * O_pad * 4 + tb_ * tH_ * 4  # fc2 acc + fc1 intermediate
        return streamed + resident + scratch

    while tb > 256 and _budget(tb, tH) > int(0.6 * vmem_cap):
        tb //= 2

    n_b = pl.cdiv(B, tb)
    n_h = H // tH
    budget = _budget(tb, tH)
    vmem_limit = int(min(max(int(1.5 * budget), 32 << 20), int(0.8 * vmem_cap)))

    # Single-buffer blocks whose index never changes; double-buffer streamed ones.
    resident_mode = pl.Buffered(1) if n_h == 1 else pl.Buffered(2)

    cost = pl.CostEstimate(
        flops=2 * B * (I * H + H * O_pad),
        transcendentals=B * H,
        bytes_accessed=(x_in.size * in_item
                        + params.w1t.size * in_item
                        + params.w2t.size * in_item
                        + (params.b1.size + params.b2.size) * 4
                        + B * O_pad * out_item),
    )

    out = pl.pallas_call(
        _mlp_kernel,
        out_shape=jax.ShapeDtypeStruct((B, O_pad), x.dtype),
        grid_spec=pltpu.PrefetchScalarGridSpec(
            num_scalar_prefetch=0,
            grid=(n_b, n_h),
            in_specs=[
                pl.BlockSpec((tb, I), lambda i, h: (i, 0)),          # x: streamed
                pl.BlockSpec((I, tH), lambda i, h: (0, h),
                             pipeline_mode=resident_mode),           # w1t
                pl.BlockSpec((1, tH), lambda i, h: (0, h),
                             pipeline_mode=resident_mode),           # b1
                pl.BlockSpec((tH, O_pad), lambda i, h: (h, 0),
                             pipeline_mode=resident_mode),           # w2t
                pl.BlockSpec((1, O_pad), lambda i, h: (0, 0),
                             pipeline_mode=pl.Buffered(1)),          # b2: constant
            ],
            out_specs=pl.BlockSpec((tb, O_pad), lambda i, h: (i, 0)),
            scratch_shapes=[pltpu.VMEM((tb, O_pad), jnp.float32)],
        ),
        compiler_params=pltpu.CompilerParams(
            dimension_semantics=("parallel", "arbitrary"),
            vmem_limit_bytes=vmem_limit,
        ),
        cost_estimate=cost,
    )(x_in, params.w1t, params.b1, params.w2t, params.b2)

    if O_pad != O:
        out = out[:, :O]  # drop lane padding (zero columns)
    return out


def _reference(x, w1, b1, w2, b2):
    h = jax.nn.sigmoid(x @ w1.T + b1)
    return h @ w2.T + b2


if __name__ == "__main__":
    # Small shapes consistent with the module's forward.
    batch, input_size, hidden_size, output_size = 8, 32, 32, 16

    key = jax.random.PRNGKey(0)
    kx, kw1, kb1, kw2, kb2 = jax.random.split(key, 5)

    x = jax.random.normal(kx, (batch, input_size), dtype=jnp.float32)
    # PyTorch-Linear-style parameter shapes.
    w1 = jax.random.normal(kw1, (hidden_size, input_size), dtype=jnp.float32) * 0.1
    b1 = jax.random.normal(kb1, (hidden_size,), dtype=jnp.float32) * 0.1
    w2 = jax.random.normal(kw2, (output_size, hidden_size), dtype=jnp.float32) * 0.1
    b2 = jax.random.normal(kb2, (output_size,), dtype=jnp.float32) * 0.1

    # One-time prep (transpose / pad / optional bf16 cast) — hoisted out of the
    # per-call path.  f32 operands at toy shapes keep the 1e-5 tolerance; pass
    # matmul_dtype=jnp.bfloat16 at production sizes on any generation.
    params = prepare_params(w1, b1, w2, b2, matmul_dtype=None)

    fwd = jax.jit(functools.partial(simple_feedforward_net, params=params))
    out = jax.block_until_ready(fwd(x))

    ref = _reference(x, w1, b1, w2, b2)
    assert out.shape == (batch, output_size)
    assert jnp.allclose(out, ref, atol=1e-5, rtol=1e-5), "mismatch vs reference"

    print("KERNEL_OK")
</pallas_src>

<mosaic_0001>
module attributes {stable_mosaic.version = 11 : i64} {
  func.func @_mlp_kernel(%arg0: i32, %arg1: i32, %arg2: memref<8x32xf32, #tpu.memory_space<vmem>>, %arg3: memref<32x32xf32, #tpu.memory_space<vmem>>, %arg4: memref<1x32xf32, #tpu.memory_space<vmem>>, %arg5: memref<32x128xf32, #tpu.memory_space<vmem>>, %arg6: memref<1x128xf32, #tpu.memory_space<vmem>>, %arg7: memref<8x128xf32, #tpu.memory_space<vmem>>, %arg8: memref<8x128xf32, #tpu.memory_space<vmem>>) attributes {dimension_semantics = [#tpu.dimension_semantics<parallel>, #tpu.dimension_semantics<arbitrary>], iteration_bounds = array<i64: 1, 1>, scalar_prefetch = 0 : i64, scratch_operands = 1 : i64, tpu.core_type = #tpu.core_type<tc>, window_params = [{transform_indices = @transform_0, window_bounds = array<i64: 8, 32>}, {pipeline_mode = #tpu.pipeline_mode<synchronous>, transform_indices = @transform_1, window_bounds = array<i64: 32, 32>}, {pipeline_mode = #tpu.pipeline_mode<synchronous>, transform_indices = @transform_2, window_bounds = array<i64: 1, 32>}, {pipeline_mode = #tpu.pipeline_mode<synchronous>, transform_indices = @transform_3, window_bounds = array<i64: 32, 128>}, {pipeline_mode = #tpu.pipeline_mode<synchronous>, transform_indices = @transform_4, window_bounds = array<i64: 1, 128>}, {transform_indices = @transform_5, window_bounds = array<i64: 8, 128>}]} {
    %c0_i32 = arith.constant 0 : i32
    %0 = arith.cmpi eq, %arg1, %c0_i32 : i32
    %1 = arith.extui %0 : i1 to i32
    %c0_i32_0 = arith.constant 0 : i32
    %2 = arith.cmpi ne, %1, %c0_i32_0 : i32
    scf.if %2 {
      %cst_16 = arith.constant 0.000000e+00 : f32
      %22 = vector.broadcast %cst_16 : f32 to vector<8x128xf32>
      %c0_17 = arith.constant 0 : index
      %c0_18 = arith.constant 0 : index
      %23 = vector.load %arg8[%c0_17, %c0_18] : memref<8x128xf32, #tpu.memory_space<vmem>>, vector<8x128xf32>
      tpu.vector_store %arg8[%c0_17, %c0_18], %22 {strides = array<i32>} : memref<8x128xf32, #tpu.memory_space<vmem>>, vector<8x128xf32>,
    } else {
    }
    %c0 = arith.constant 0 : index
    %c0_1 = arith.constant 0 : index
    %3 = vector.load %arg2[%c0, %c0_1] : memref<8x32xf32, #tpu.memory_space<vmem>>, vector<8x32xf32>
    %c0_2 = arith.constant 0 : index
    %c0_3 = arith.constant 0 : index
    %4 = vector.load %arg3[%c0_2, %c0_3] : memref<32x32xf32, #tpu.memory_space<vmem>>, vector<32x32xf32>
    %cst = arith.constant dense<0.000000e+00> : vector<8x32xf32>
    %5 = tpu.matmul %3, %4, %cst {dimension_numbers = #tpu.dot_dimension_numbers<[1], [0], [0], [1], [0, 0, 1, 1], [], []>} : vector<8x32xf32>, vector<32x32xf32>, vector<8x32xf32> -> vector<8x32xf32>
    %c0_4 = arith.constant 0 : index
    %c0_5 = arith.constant 0 : index
    %6 = vector.load %arg4[%c0_4, %c0_5] : memref<1x32xf32, #tpu.memory_space<vmem>>, vector<1x32xf32>
    %7 = vector.broadcast %6 : vector<1x32xf32> to vector<8x32xf32>
    %8 = arith.addf %5, %7 : vector<8x32xf32>
    %9 = arith.negf %8 : vector<8x32xf32>
    %10 = math.exp %9 : vector<8x32xf32>
    %cst_6 = arith.constant 1.000000e+00 : f32
    %11 = vector.broadcast %cst_6 : f32 to vector<8x32xf32>
    %12 = arith.addf %11, %10 : vector<8x32xf32>
    %13 = arith.divf %11, %12 : vector<8x32xf32>
    %c0_7 = arith.constant 0 : index
    %c0_8 = arith.constant 0 : index
    %14 = vector.load %arg8[%c0_7, %c0_8] : memref<8x128xf32, #tpu.memory_space<vmem>>, vector<8x128xf32>
    %c0_9 = arith.constant 0 : index
    %c0_10 = arith.constant 0 : index
    %15 = vector.load %arg5[%c0_9, %c0_10] : memref<32x128xf32, #tpu.memory_space<vmem>>, vector<32x128xf32>
    %cst_11 = arith.constant dense<0.000000e+00> : vector<8x128xf32>
    %16 = tpu.matmul %13, %15, %cst_11 {dimension_numbers = #tpu.dot_dimension_numbers<[1], [0], [0], [1], [0, 0, 1, 1], [], []>} : vector<8x32xf32>, vector<32x128xf32>, vector<8x128xf32> -> vector<8x128xf32>
    %17 = arith.addf %14, %16 : vector<8x128xf32>
    %c0_12 = arith.constant 0 : index
    %c0_13 = arith.constant 0 : index
    %18 = vector.load %arg8[%c0_12, %c0_13] : memref<8x128xf32, #tpu.memory_space<vmem>>, vector<8x128xf32>
    tpu.vector_store %arg8[%c0_12, %c0_13], %17 {strides = array<i32>} : memref<8x128xf32, #tpu.memory_space<vmem>>, vector<8x128xf32>,
    %c0_i32_14 = arith.constant 0 : i32
    %19 = arith.cmpi eq, %arg1, %c0_i32_14 : i32
    %20 = arith.extui %19 : i1 to i32
    %c0_i32_15 = arith.constant 0 : i32
    %21 = arith.cmpi ne, %20, %c0_i32_15 : i32
    scf.if %21 {
      %c0_16 = arith.constant 0 : index
      %c0_17 = arith.constant 0 : index
      %22 = vector.load %arg8[%c0_16, %c0_17] : memref<8x128xf32, #tpu.memory_space<vmem>>, vector<8x128xf32>
      %c0_18 = arith.constant 0 : index
      %c0_19 = arith.constant 0 : index
      %23 = vector.load %arg6[%c0_18, %c0_19] : memref<1x128xf32, #tpu.memory_space<vmem>>, vector<1x128xf32>
      %24 = vector.broadcast %23 : vector<1x128xf32> to vector<8x128xf32>
      %25 = arith.addf %22, %24 : vector<8x128xf32>
      %c0_20 = arith.constant 0 : index
      %c0_21 = arith.constant 0 : index
      %26 = vector.load %arg7[%c0_20, %c0_21] : memref<8x128xf32, #tpu.memory_space<vmem>>, vector<8x128xf32>
      tpu.vector_store %arg7[%c0_20, %c0_21], %25 {strides = array<i32>} : memref<8x128xf32, #tpu.memory_space<vmem>>, vector<8x128xf32>,
    } else {
    }
    return
  }
  func.func @transform_0(%arg0: i32, %arg1: i32) -> (i32, i32) {
    %c0_i32 = arith.constant 0 : i32
    %c0_i32_0 = arith.constant 0 : i32
    return %arg0, %c0_i32 : i32, i32
  }
  func.func @transform_1(%arg0: i32, %arg1: i32) -> (i32, i32) {
    %c0_i32 = arith.constant 0 : i32
    %c0_i32_0 = arith.constant 0 : i32
    return %c0_i32, %arg1 : i32, i32
  }
  func.func @transform_2(%arg0: i32, %arg1: i32) -> (i32, i32) {
    %c0_i32 = arith.constant 0 : i32
    %c0_i32_0 = arith.constant 0 : i32
    return %c0_i32, %arg1 : i32, i32
  }
  func.func @transform_3(%arg0: i32, %arg1: i32) -> (i32, i32) {
    %c0_i32 = arith.constant 0 : i32
    %c0_i32_0 = arith.constant 0 : i32
    return %arg1, %c0_i32 : i32, i32
  }
  func.func @transform_4(%arg0: i32, %arg1: i32) -> (i32, i32) {
    %c0_i32 = arith.constant 0 : i32
    %c0_i32_0 = arith.constant 0 : i32
    %c0_i32_1 = arith.constant 0 : i32
    return %c0_i32, %c0_i32_0 : i32, i32
  }
  func.func @transform_5(%arg0: i32, %arg1: i32) -> (i32, i32) {
    %c0_i32 = arith.constant 0 : i32
    %c0_i32_0 = arith.constant 0 : i32
    return %arg0, %c0_i32 : i32, i32
  }
}

</mosaic_0001>

<bundles_post_ra>
// kernel: simple_feedforward_net.1
= control target key start
LH: loop header
LB: loop body
LE: loop exit
PB: predicated region body
PF: predicated region fallthrough
CT: control target
= control target key end

     0   :  { %10 = vsyncpa [#allocation4], 0  ;;  %s523_s0 = inlined_call_operand.hbm [shape: f32[8,32], index: 0, kind: input, shape index: {}]   ;;  %s524_s1 = inlined_call_operand.hbm [shape: f32[32,32], index: 1, kind: input, shape index: {}]   ;;  %s525_s2 = inlined_call_operand.vmem [shape: f32[1,32], index: 2, kind: input, shape index: {}]   ;;  %s526_s3 = inlined_call_operand.hbm [shape: f32[32,128], index: 3, kind: input, shape index: {}]   ;;  %s527_s4 = inlined_call_operand.vmem [shape: f32[1,128], index: 4, kind: input, shape index: {}]   ;;  %s528_s5 = inlined_call_operand.hbm [shape: f32[8,128], index: 5, kind: output, shape index: {}]  }
   0x1   :  { %11 = vsyncpa [#allocation7], 0 }
   0x2   :  { %12 = vsyncpa [#allocation5], 0  ;;  %s422_s18 = smov [#allocation6]   ;;  %s328_s22 = scalar_lea.hbm %s524_s1, 512 }
   0x3   :  { %s28_s19 = sshll.u32 %s422_s18, 4  ;;  %p329_p0 = scmp.ne.s32.totalorder %s524_s1, %s328_s22  ;;  %s29_s19 = int_to_ptr.vmem [resolvable:$true] %s28_s19 }
   0x4   :  { %p332_p1 = scmp.lt.u32.totalorder %s328_s22, %s524_s1 }
   0x6   :  { %p334_p2 = pnand %p332_p1, %p329_p0 }
   0x8   :  { %337 = shalt.err (!%p334_p2)
}
   0x9   :  { %s338_s27 = scalar_lea.vmem %s29_s19, 512  ;;  %p343_p4 = scmp.lt.s32.totalorder %s29_s19, %s29_s19 }
   0xa   :  { %p339_p3 = scmp.ne.s32.totalorder %s29_s19, %s338_s27  ;;  %p344_p5 = scmp.lt.s32.totalorder %s338_s27, %s338_s27 }
   0xc   :  { %p345_p6 = por %p344_p5, %p343_p4 }
   0xe   :  { %p346_p7 = pnand %p345_p6, %p339_p3 }
  0x10   :  { %349 = shalt.err (!%p346_p7)
}
  0x11   :  { %s423_s28 = smov 128   ;;  %s424_s29 = smov 8  }
  0x12   :  { %34 = dma.hbm_to_vmem [thread:$0]  %s524_s1, 512, %s29_s19, [#allocation7], %s423_s28, %s423_s28, %s424_s29  }
  0x13   :  { %s425_s7 = smov [#allocation3]   ;;  %s426_s9 = smov [#allocation8]  }
  0x14   :  { %s19_s8 = sshll.u32 %s425_s7, 4  ;;  %s42_s10 = sshll.u32 %s426_s9, 4  ;;  %s20_s8 = int_to_ptr.vmem [resolvable:$true] %s19_s8  ;;  %s43_s10 = int_to_ptr.vmem [resolvable:$true] %s42_s10 }
  0x15   :  { %s350_s13 = scalar_lea.hbm %s523_s0, 128 }
  0x16   :  { %p351_p8 = scmp.ne.s32.totalorder %s523_s0, %s350_s13  ;;  %p354_p9 = scmp.lt.u32.totalorder %s350_s13, %s523_s0 }
  0x18   :  { %p356_p10 = pnand %p354_p9, %p351_p8 }
  0x1a   :  { %359 = shalt.err (!%p356_p10)
}
  0x1b   :  { %s360_s1 = scalar_lea.vmem %s20_s8, 128  ;;  %p365_p12 = scmp.lt.s32.totalorder %s20_s8, %s20_s8 }
  0x1c   :  { %p361_p11 = scmp.ne.s32.totalorder %s20_s8, %s360_s1  ;;  %p366_p13 = scmp.lt.s32.totalorder %s360_s1, %s360_s1 }
  0x1e   :  { %p367_p0 = por %p366_p13, %p365_p12 }
  0x20   :  { %p368_p1 = pnand %p367_p0, %p361_p11 }
  0x22   :  { %371 = shalt.err (!%p368_p1)
}
  0x23   :  { %22 = dma.hbm_to_vmem [thread:$0]  %s523_s0, 128, %s20_s8, [#allocation4]  }
  0x24   :  { %s372_s22 = scalar_lea.hbm %s526_s3, 512 }
  0x25   :  { %p373_p2 = scmp.ne.s32.totalorder %s526_s3, %s372_s22  ;;  %p376_p3 = scmp.lt.u32.totalorder %s372_s22, %s526_s3 }
  0x27   :  { %p378_p4 = pnand %p376_p3, %p373_p2 }
  0x29   :  { %381 = shalt.err (!%p378_p4)
}
  0x2a   :  { %s382_s27 = scalar_lea.vmem %s43_s10, 512  ;;  %p387_p6 = scmp.lt.s32.totalorder %s43_s10, %s43_s10 }
  0x2b   :  { %p383_p5 = scmp.ne.s32.totalorder %s43_s10, %s382_s27  ;;  %p388_p7 = scmp.lt.s32.totalorder %s382_s27, %s382_s27 }
  0x2d   :  { %p389_p8 = por %p388_p7, %p387_p6 }
  0x2f   :  { %p390_p9 = pnand %p389_p8, %p383_p5 }
  0x31   :  { %393 = shalt.err (!%p390_p9)
}
  0x32   :  { %48 = dma.hbm_to_vmem [thread:$0]  %s526_s3, 512, %s43_s10, [#allocation7], %s423_s28, %s423_s28, %s424_s29  }
  0x33   :  { %416 = dma.done.wait [#allocation4], 128  }
  0x34   :  { %417 = vsyncadd [#allocation4], 4294967168 }
  0x35   :  { %418 = dma.done.wait [#allocation7], 1024  }
  0x36   :  { %419 = vsyncadd [#allocation7], 4294966272  ;;  %v427_v0 = vmov 0.0|0.0   ;;  %vm428_vm0 = vmmov 0   ;;  %v429_v1 = vmov 0.0   ;;  %v66_v2 = vld [vmem:[#allocation6] sm:$0xff] }
  0x37   :  { %303 = vmatprep.subr.bf16.mxu0 %v427_v0  ;;  %289 = vmatprep.mubr.msk.f32.mxu0 %vm428_vm0, %v429_v1  ;;  %v67_v3 = vld [vmem:[#allocation6 + $0x8] sm:$0xff]  ;;  %v68_v4 = vld [vmem:[#allocation6 + $0x10] sm:$0xff]  ;;  %v69_v6 = vld [vmem:[#allocation6 + $0x18] sm:$0xff]  ;;  %vm77_vm1 = vcmask 261120   ;;  %s430_s7 = smov [#allocation9]  }
  0x38   :  { %309 = vmatprep.subr.bf16.mxu1 %v427_v0  ;;  %300 = vmatprep.mubr.msk.f32.mxu1 %vm428_vm0, %v429_v1  ;;  %v304_v5 = vpack.c.bf16 %v67_v3, %v66_v2  ;;  %v307_v7 = vpack.c.bf16 %v69_v6, %v68_v4  ;;  %v65_v8 = vld [vmem:[#allocation3] sm:$0xff]  ;;  %v158_v9 = vld [vmem:[#allocation8] sm:$0xff]  ;;  %v159_v10 = vld [vmem:[#allocation8 + $0x8] sm:$0xff]  ;;  %s256_s8 = sshll.u32 %s430_s7, 4  ;;  %s257_s8 = int_to_ptr.vmem [resolvable:$true] %s256_s8 }
  0x39   :  { %v160_v11 = vld [vmem:[#allocation8 + $0x10] sm:$0xff]  ;;  %v310_v12 = vpack.c.bf16 %v159_v10, %v158_v9  ;;  %v161_v13 = vld [vmem:[#allocation8 + $0x18] sm:$0xff]  ;;  %p399_p11 = scmp.lt.s32.totalorder %s257_s8, %s257_s8 }
  0x3a   :  { %305 = vmatpush3.bf16.msra.mxu0 %v304_v5  ;;  %v313_v14 = vpack.c.bf16 %v161_v13, %v160_v11  ;;  %v266_v15 = vld [vmem:[%s525_s2] ss:$0 sm:$0xff]  ;;  %s394_s2 = scalar_lea.vmem %s257_s8, 128 }
  0x3b   :  { %306 = vmatprep.subr.bf16.mxu0 %v427_v0  ;;  %311 = vmatpush3.bf16.msra.mxu1 %v310_v12  ;;  %v270_v23 = vld [vmem:[%s527_s4] ss:$0 sm:$0xff]  ;;  %p395_p10 = scmp.ne.s32.totalorder %s257_s8, %s394_s2  ;;  %p400_p12 = scmp.lt.s32.totalorder %s394_s2, %s394_s2 }
  0x3c   :  { %312 = vmatprep.subr.bf16.mxu1 %v427_v0 }
  0x3d   :  { %p401_p13 = por %p400_p12, %p399_p11 }
  0x3e   :  { %308 = vmatpush3.bf16.msra.mxu0 %v307_v7 }
  0x3f   :  { %314 = vmatpush3.bf16.msra.mxu1 %v313_v14  ;;  %p402_p0 = pnand %p401_p13, %p395_p10 }
  0x41   :  { %290 = vmatmul.mubr.msk.f32.vlgmr.msra.gmra.mrb[0].mxu0 %vm77_vm1, %v65_v8 }
 0x114   :  { %v147_v16 = vpop.f32.mrb[0].mxu0 }
 0x115   :  { %v148_v17 = vadd.f32 %v266_v15, %v147_v16  ;;  %v291_v18 = vpop.f32.mrb[1].mxu0 }
 0x117   :  { %v268_v19 = vmul.f32 -1.442695, %v148_v17 }
 0x119   :  { %324 = vpow2.f32 %v268_v19 }
 0x123   :  { %v325_v20 = vpop.eup %324 }
 0x124   :  { %v154_v21 = vadd.f32 1.0, %v325_v20 }
 0x126   :  { %326 = vrcp.f32 %v154_v21 }
 0x130   :  { %v327_v22 = vpop.eup %326 }
 0x131   :  { %301 = vmatmul.mubr.msk.f32.vlgmr.msra.gmra.mrb[0].mxu1 %vm77_vm1, %v327_v22 }
 0x204   :  { %v231_v24 = vpop.f32.mrb[0].mxu1 }
 0x205   :  { %v248_v25 = vadd.f32 %v270_v23, %v231_v24  ;;  %v302_v26 = vpop.f32.mrb[1].mxu1 }
 0x207   :  { %249 = vst [vmem:[#allocation9] sm:$0xff] %v248_v25 }
 0x208   :  { %405 = shalt.err (!%p402_p0)
}
 0x209   :  { %s406_s11 = scalar_lea.hbm %s528_s5, 128 }
 0x20a   :  { %p407_p1 = scmp.ne.s32.totalorder %s528_s5, %s406_s11  ;;  %p410_p2 = scmp.lt.u32.totalorder %s406_s11, %s528_s5 }
 0x20c   :  { %p412_p3 = pnand %p410_p2, %p407_p1 }
 0x20e   :  { %415 = shalt.err (!%p412_p3)
}
 0x20f   :  { %259 = dma.vmem_to_hbm [thread:$0]  %s257_s8, 128, %s528_s5, [#allocation5]  }
 0x210   :  { %420 = dma.done.wait [#allocation5], 128  }
 0x211   :  { %421 = vsyncadd [#allocation5], 4294967168 }
 0x212   :  { %263 = vsyncpa [#allocation4], 1 }
 0x213   :  { %264 = vsyncpa [#allocation7], 1 }
 0x214   :  { %265 = vsyncpa [#allocation5], 1 }

</bundles_post_ra>
